<compile_context>
chip_gen: v5e
topology: v5e:2x2
jax: 0.10.0
libtpu: 0.0.40
codegen_flags: <defaults>
</compile_context>

<pallas_src>
import numpy as np
import jax
import jax.numpy as jnp
from jax import lax
from jax.experimental import pallas as pl
from jax.experimental.pallas import tpu as pltpu

_LANE = 128      # lane width (last dim granularity)
_SUBLANE = 8     # f32 sublane granularity (second-to-last dim)


def _round_up(x, m):
    return ((x + m - 1) // m) * m


def _vmem_budget_bytes():
    """Generation-aware practical VMEM budget (~75% of physical)."""
    cap = None
    try:
        info = pltpu.get_tpu_info()
        cap = getattr(info, "vmem_capacity_bytes", None)
    except Exception:
        cap = None
    if not cap:
        cap = 64 * 2**20  # conservative (v7x-sized) fallback
    # 128 MiB (v5e/v6e) -> 96 MiB budget; 64 MiB (v7x) -> 48 MiB budget.
    return int(cap) * 3 // 4


# ---------------------------------------------------------------------------
# Kernels
# ---------------------------------------------------------------------------
def _grouped_affine_kernel(x_ref, wT_ref, b_ref, o_ref):
    """G blocks per grid step.

    x_ref : (G, tm, d_pad)      wT_ref: (G, d_pad, d_pad)
    b_ref : (G, 1, d_pad) f32   o_ref : (G, tm, d_pad)
    """
    for g in range(x_ref.shape[0]):            # G is static and small
        acc = jnp.dot(x_ref[g], wT_ref[g], preferred_element_type=jnp.float32)
        o_ref[g] = (acc + b_ref[g]).astype(o_ref.dtype)


def _ktiled_affine_kernel(x_ref, wT_ref, b_ref, o_ref, acc_ref):
    """K-tiled variant for large d_pad (weight block = (tk, d_pad)).

    x_ref : (tm, tk)   wT_ref: (tk, d_pad)   b_ref: (1, d_pad) f32
    o_ref : (tm, d_pad)   acc_ref: (tm, d_pad) f32 scratch
    Grid = (m_tiles, blocks, k_tiles); k is the innermost 'arbitrary' axis.
    """
    @pl.when(pl.program_id(2) == 0)
    def _init():
        acc_ref[...] = jnp.zeros_like(acc_ref)

    acc_ref[...] += jnp.dot(x_ref[...], wT_ref[...],
                            preferred_element_type=jnp.float32)

    @pl.when(pl.program_id(2) == pl.num_programs(2) - 1)
    def _finalize():
        o_ref[...] = (acc_ref[...] + b_ref[...]).astype(o_ref.dtype)


# ---------------------------------------------------------------------------
# One-time parameter packing (hoisted out of the ODE-solver hot path).
# Sub-systems are bucketed by padded width d_pad = round_up(d_i, 128).
# ---------------------------------------------------------------------------
def pack_params(weights, biases, dims, compute_dtype=jnp.float32):
    """Pack per-subsystem (A_i, b_i) into per-bucket stacked tensors.

    compute_dtype: dtype of the MXU operands (use jnp.bfloat16 to halve HBM
    traffic when tolerances allow); accumulation is always f32, bias stays f32.
    """
    total_dim = int(sum(int(d) for d in dims))
    col_starts = [0]
    for d in dims[:-1]:
        col_starts.append(col_starts[-1] + int(d))

    by_width = {}
    for i, d in enumerate(dims):
        by_width.setdefault(_round_up(int(d), _LANE), []).append(i)

    buckets = []
    for d_pad in sorted(by_width):
        idxs = by_width[d_pad]
        nb = len(idxs)
        # Group small blocks so several are processed per grid step.
        group = min(nb, 8) if (d_pad <= 256 and nb >= 4) else 1
        nb_padded = _round_up(nb, group)
        w = np.zeros((nb_padded, d_pad, d_pad), dtype=np.float32)
        b = np.zeros((nb_padded, 1, d_pad), dtype=np.float32)
        block_dims, starts = [], []
        for j, i in enumerate(idxs):
            d = int(dims[i])
            w[j, :d, :d] = np.asarray(weights[i], dtype=np.float32).T
            b[j, 0, :d] = np.asarray(biases[i], dtype=np.float32)
            block_dims.append(d)
            starts.append(col_starts[i])
        buckets.append(dict(
            d_pad=int(d_pad), nb=nb, nb_padded=int(nb_padded), group=int(group),
            block_dims=block_dims, col_starts=starts,
            w=jnp.asarray(w, dtype=compute_dtype),   # cast ONCE, here
            b=jnp.asarray(b, dtype=jnp.float32),     # bias add in f32
        ))
    return dict(dims=[int(d) for d in dims], total_dim=total_dim,
                compute_dtype=compute_dtype, buckets=buckets)


# ---------------------------------------------------------------------------
# One-time tiling plan (generation-aware VMEM / tile sizing, K-tiling, 2-TC).
# ---------------------------------------------------------------------------
def plan_tiling(params, batch, *, batch_tile=None):
    budget = _vmem_budget_bytes()
    esz = np.dtype(params["compute_dtype"]).itemsize  # x / w / out element size
    if batch_tile is not None:
        tm_target = _round_up(int(batch_tile), _SUBLANE)
    else:
        tm_target = 1024 if budget >= (80 << 20) else 512

    bucket_plans = []
    for bk in params["buckets"]:
        d_pad, G = bk["d_pad"], bk["group"]
        bias_bytes = 2 * G * d_pad * 4
        full_w_bytes = 2 * G * d_pad * d_pad * esz  # double-buffered full weight
        use_k = (G == 1) and (full_w_bytes > budget * 2 // 5)

        if use_k:
            # Weight tile (tk, d_pad), double-buffered, <= budget/4; tk | d_pad.
            tk = max(_LANE, (budget // 4) // (2 * d_pad * esz) // _LANE * _LANE)
            tk = min(tk, d_pad)
            while d_pad % tk != 0:
                tk -= _LANE
            n_k = d_pad // tk
            w_tile_bytes = 2 * tk * d_pad * esz
            per_row = 2 * tk * esz + 2 * d_pad * esz + d_pad * 4  # x + out + acc
            avail = budget - w_tile_bytes - 2 * d_pad * 4
        else:
            tk, n_k = d_pad, 1
            per_row = G * d_pad * (2 * esz + 2 * esz)             # x + out
            avail = budget - full_w_bytes - bias_bytes

        rows = max(avail, 0) // max(per_row, 1)
        tm_cap = max(_SUBLANE, min(tm_target, (rows // _SUBLANE) * _SUBLANE))

        if batch <= tm_cap:
            tm, n_m = _round_up(max(int(batch), 1), _SUBLANE), 1
        else:
            n_m = -(-int(batch) // tm_cap)                        # ceil div
            tm = _round_up(-(-int(batch) // n_m), _SUBLANE)       # minimal pad
        batch_pad = n_m * tm

        if use_k:
            foot = (2 * tm * tk * esz + 2 * tk * d_pad * esz
                    + 2 * tm * d_pad * esz + 2 * d_pad * 4 + tm * d_pad * 4)
        else:
            foot = 4 * G * tm * d_pad * esz + full_w_bytes + bias_bytes
        vmem_limit = int(min(budget, max(foot + (2 << 20), 16 << 20)))

        # v7x 2-TC balance: shard on the batch-tile axis when its extent is even.
        split2 = (not use_k) and (n_m >= 2) and (n_m % 2 == 0)

        bucket_plans.append(dict(tm=int(tm), n_m=int(n_m), batch_pad=int(batch_pad),
                                 use_k=bool(use_k), tk=int(tk), n_k=int(n_k),
                                 split2=bool(split2), vmem=vmem_limit))
    return dict(batch=int(batch), buckets=bucket_plans)


# ---------------------------------------------------------------------------
# State pack / unpack (one-time, OUTSIDE the ODE hot loop).
# ---------------------------------------------------------------------------
def pack_state(x, params, plan):
    if x.ndim == 1:
        x = x[None, :]
    batch = x.shape[0]
    assert batch == plan["batch"]
    assert x.shape[1] == params["total_dim"]
    dtype = params["compute_dtype"]
    packed = []
    for bk, bp in zip(params["buckets"], plan["buckets"]):
        xb = jnp.zeros((bk["nb_padded"], bp["batch_pad"], bk["d_pad"]), dtype)
        for j, (d, cs) in enumerate(zip(bk["block_dims"], bk["col_starts"])):
            xb = xb.at[j, :batch, :d].set(x[:, cs:cs + d].astype(dtype))
        packed.append(xb)
    return tuple(packed)


def unpack_state(packed, params, plan, out_dtype=None):
    batch = plan["batch"]
    dtype = out_dtype if out_dtype is not None else params["compute_dtype"]
    out = jnp.zeros((batch, params["total_dim"]), dtype)
    for xb, bk in zip(packed, params["buckets"]):
        for j, (d, cs) in enumerate(zip(bk["block_dims"], bk["col_starts"])):
            out = out.at[:, cs:cs + d].set(xb[j, :batch, :d].astype(dtype))
    return out


# ---------------------------------------------------------------------------
# HOT PATH: packed-in / packed-out forward (no pad/stack/slice/concat over x).
# ---------------------------------------------------------------------------
def _bucket_forward(xb, bk, bp, dtype):
    d_pad, G, nb_padded = bk["d_pad"], bk["group"], bk["nb_padded"]
    tm, n_m, batch_pad = bp["tm"], bp["n_m"], bp["batch_pad"]
    w, bias = bk["w"], bk["b"]
    out_shape = jax.ShapeDtypeStruct((nb_padded, batch_pad, d_pad), dtype)

    if bp["use_k"]:
        tk, n_k = bp["tk"], bp["n_k"]
        return pl.pallas_call(
            _ktiled_affine_kernel,
            out_shape=out_shape,
            grid=(n_m, nb_padded, n_k),
            in_specs=[
                pl.BlockSpec((None, tm, tk), lambda m, blk, k: (blk, m, k)),
                pl.BlockSpec((None, tk, d_pad), lambda m, blk, k: (blk, k, 0)),
                pl.BlockSpec((None, 1, d_pad), lambda m, blk, k: (blk, 0, 0)),
            ],
            out_specs=pl.BlockSpec((None, tm, d_pad),
                                   lambda m, blk, k: (blk, m, 0)),
            scratch_shapes=[pltpu.VMEM((tm, d_pad), jnp.float32)],
            compiler_params=pltpu.CompilerParams(
                dimension_semantics=("parallel", "parallel", "arbitrary"),
                vmem_limit_bytes=bp["vmem"]),
        )(xb, w, bias)

    nbg = nb_padded // G
    if bp["split2"]:
        half = n_m // 2
        grid = (2, nbg, half)
        x_spec = pl.BlockSpec((G, tm, d_pad),
                              lambda s, blk, m: (blk, s * half + m, 0))
        w_spec = pl.BlockSpec((G, d_pad, d_pad), lambda s, blk, m: (blk, 0, 0))
        b_spec = pl.BlockSpec((G, 1, d_pad), lambda s, blk, m: (blk, 0, 0))
        semantics = ("parallel", "arbitrary", "arbitrary")
    else:
        grid = (nbg, n_m)
        x_spec = pl.BlockSpec((G, tm, d_pad), lambda blk, m: (blk, m, 0))
        w_spec = pl.BlockSpec((G, d_pad, d_pad), lambda blk, m: (blk, 0, 0))
        b_spec = pl.BlockSpec((G, 1, d_pad), lambda blk, m: (blk, 0, 0))
        semantics = ("parallel", "parallel")

    return pl.pallas_call(
        _grouped_affine_kernel,
        out_shape=out_shape,
        grid=grid,
        in_specs=[x_spec, w_spec, b_spec],
        out_specs=x_spec,
        compiler_params=pltpu.CompilerParams(
            dimension_semantics=semantics, vmem_limit_bytes=bp["vmem"]),
    )(xb, w, bias)


def composite_forward_packed(t, packed, params, plan):
    """dx/dt in the packed bucket layout (closed under the dynamics: padded
    rows/cols of A^T and b are zero, so padded state entries stay zero)."""
    del t  # linear sub-systems are time-invariant (kept for API parity)
    return tuple(_bucket_forward(xb, bk, bp, params["compute_dtype"])
                 for xb, bk, bp in zip(packed, params["buckets"], plan["buckets"]))


# ---------------------------------------------------------------------------
# Plain-XLA fallback for tiny shapes (pallas_call launch overhead dominates).
# ---------------------------------------------------------------------------
def _composite_forward_xla(t, x, params):
    del t
    out = jnp.zeros((x.shape[0], params["total_dim"]), x.dtype)
    for bk in params["buckets"]:
        for j, (d, cs) in enumerate(zip(bk["block_dims"], bk["col_starts"])):
            A_T = bk["w"][j, :d, :d].astype(x.dtype)
            bb = bk["b"][j, 0, :d].astype(x.dtype)
            dx = jnp.dot(x[:, cs:cs + d], A_T,
                         precision=lax.Precision.HIGHEST) + bb
            out = out.at[:, cs:cs + d].set(dx)
    return out


# ---------------------------------------------------------------------------
# Convenience wrapper matching LearnableCompositeSystem.forward(t, x).
# For ODE loops, prefer pack_state once + composite_forward_packed per step.
# ---------------------------------------------------------------------------
def composite_forward(t, x, params, *, use_pallas=None, batch_tile=None):
    if x.ndim == 1:          # mirrors x.unsqueeze(0); PyTorch returns (1, D)
        x = x[None, :]
    total_dim = params["total_dim"]
    assert x.shape[1] == total_dim, f"Input must have {total_dim} dimensions."
    batch = x.shape[0]
    if use_pallas is None:
        use_pallas = (total_dim >= 256) or (batch >= 128)
    if not use_pallas:
        return _composite_forward_xla(t, x, params)
    plan = plan_tiling(params, batch, batch_tile=batch_tile)
    packed = pack_state(x, params, plan)
    d_packed = composite_forward_packed(t, packed, params, plan)
    return unpack_state(d_packed, params, plan, out_dtype=x.dtype)


# ---------------------------------------------------------------------------
# Host-side numpy reference mirroring the PyTorch loop (split / apply / cat).
# ---------------------------------------------------------------------------
def composite_forward_ref(t, x, weights, biases, dims):
    del t
    x = np.asarray(x, dtype=np.float64)
    if x.ndim == 1:
        x = x[None, :]
    parts, start = [], 0
    for A, b, d in zip(weights, biases, dims):
        A = np.asarray(A, dtype=np.float64)
        b = np.asarray(b, dtype=np.float64)
        parts.append(x[:, start:start + d] @ A.T + b)
        start += d
    return np.concatenate(parts, axis=1)


if __name__ == "__main__":
    key = jax.random.PRNGKey(0)
    t = jnp.float32(0.0)

    def make_case(k, dims, batch):
        keys = jax.random.split(k, 2 * len(dims) + 1)
        ws = [0.1 * jax.random.normal(keys[2 * i], (d, d), dtype=jnp.float32)
              for i, d in enumerate(dims)]
        bs = [0.01 * jax.random.normal(keys[2 * i + 1], (d,), dtype=jnp.float32)
              for i, d in enumerate(dims)]
        x = jax.random.normal(keys[-1], (batch, sum(dims)), dtype=jnp.float32)
        return ws, bs, x

    k1, k2, k3 = jax.random.split(key, 3)

    # TODO(synk): compute_trajectory / invariant_manifold rely on external ODE
    # and SDE solvers (odeint / torchsde); only forward() is kernelized here.
    # TODO(synk): pairing two 128-wide blocks into one 256-wide block-diagonal
    # MXU operand (review item) is not implemented; small blocks are grouped
    # per grid step instead.

    # Case 1: small homogeneous dims -> single 128-wide bucket, packed hot path.
    dims1, batch1 = [4, 8, 4], 8
    w1, b1, x1 = make_case(k1, dims1, batch1)
    p1 = pack_params(w1, b1, dims1)
    plan1 = plan_tiling(p1, batch1)
    xp1 = pack_state(x1, p1, plan1)                       # one-time pack
    dxp1 = composite_forward_packed(t, xp1, p1, plan1)    # HOT PATH (Pallas)
    out1 = jax.block_until_ready(unpack_state(dxp1, p1, plan1))
    np.testing.assert_allclose(np.asarray(out1),
                               composite_forward_ref(t, x1, w1, b1, dims1),
                               rtol=1e-4, atol=1e-4)

    # Case 2: heterogeneous dims -> two buckets (128- and 256-wide).
    dims2, batch2 = [4, 130, 8], 16
    w2, b2, x2 = make_case(k2, dims2, batch2)
    p2 = pack_params(w2, b2, dims2)
    out2 = jax.block_until_ready(composite_forward(t, x2, p2, use_pallas=True))
    np.testing.assert_allclose(np.asarray(out2),
                               composite_forward_ref(t, x2, w2, b2, dims2),
                               rtol=1e-4, atol=1e-4)

    # Case 3: many tiny blocks -> grouped kernel (G blocks per grid step).
    dims3, batch3 = [2, 3, 4, 5, 2, 3], 8
    w3, b3, x3 = make_case(k3, dims3, batch3)
    p3 = pack_params(w3, b3, dims3)
    out3 = jax.block_until_ready(composite_forward(t, x3, p3, use_pallas=True))
    np.testing.assert_allclose(np.asarray(out3),
                               composite_forward_ref(t, x3, w3, b3, dims3),
                               rtol=1e-4, atol=1e-4)

    # Auto-dispatch path (plain XLA at these tiny shapes).
    out_auto = jax.block_until_ready(composite_forward(t, x1, p1))
    np.testing.assert_allclose(np.asarray(out_auto),
                               composite_forward_ref(t, x1, w1, b1, dims1),
                               rtol=1e-4, atol=1e-4)

    print("KERNEL_OK")
</pallas_src>

<mosaic_0001>
module attributes {stable_mosaic.version = 11 : i64} {
  func.func @_grouped_affine_kernel(%arg0: i32, %arg1: i32, %arg2: memref<1x8x128xf32, #tpu.memory_space<vmem>>, %arg3: memref<1x128x128xf32, #tpu.memory_space<vmem>>, %arg4: memref<1x1x128xf32, #tpu.memory_space<vmem>>, %arg5: memref<1x8x128xf32, #tpu.memory_space<vmem>>) attributes {dimension_semantics = [#tpu.dimension_semantics<parallel>, #tpu.dimension_semantics<parallel>], iteration_bounds = array<i64: 3, 1>, scalar_prefetch = 0 : i64, scratch_operands = 0 : i64, tpu.core_type = #tpu.core_type<tc>, window_params = [{transform_indices = @transform_0, window_bounds = array<i64: 1, 8, 128>}, {transform_indices = @transform_1, window_bounds = array<i64: 1, 128, 128>}, {transform_indices = @transform_2, window_bounds = array<i64: 1, 1, 128>}, {transform_indices = @transform_3, window_bounds = array<i64: 1, 8, 128>}]} {
    %c0 = arith.constant 0 : index
    %c0_0 = arith.constant 0 : index
    %c0_1 = arith.constant 0 : index
    %0 = vector.load %arg2[%c0, %c0_0, %c0_1] : memref<1x8x128xf32, #tpu.memory_space<vmem>>, vector<1x8x128xf32>
    %1 = vector.shape_cast %0 : vector<1x8x128xf32> to vector<8x128xf32>
    %c0_2 = arith.constant 0 : index
    %c0_3 = arith.constant 0 : index
    %c0_4 = arith.constant 0 : index
    %2 = vector.load %arg3[%c0_2, %c0_3, %c0_4] : memref<1x128x128xf32, #tpu.memory_space<vmem>>, vector<1x128x128xf32>
    %3 = vector.shape_cast %2 : vector<1x128x128xf32> to vector<128x128xf32>
    %cst = arith.constant dense<0.000000e+00> : vector<8x128xf32>
    %4 = tpu.matmul %1, %3, %cst {dimension_numbers = #tpu.dot_dimension_numbers<[1], [0], [0], [1], [0, 0, 1, 1], [], []>} : vector<8x128xf32>, vector<128x128xf32>, vector<8x128xf32> -> vector<8x128xf32>
    %c0_5 = arith.constant 0 : index
    %c0_6 = arith.constant 0 : index
    %c0_7 = arith.constant 0 : index
    %5 = vector.load %arg4[%c0_5, %c0_6, %c0_7] : memref<1x1x128xf32, #tpu.memory_space<vmem>>, vector<1x1x128xf32>
    %6 = vector.shape_cast %5 : vector<1x1x128xf32> to vector<1x128xf32>
    %7 = vector.broadcast %6 : vector<1x128xf32> to vector<8x128xf32>
    %8 = arith.addf %4, %7 : vector<8x128xf32>
    %c0_8 = arith.constant 0 : index
    %c0_9 = arith.constant 0 : index
    %c0_10 = arith.constant 0 : index
    %9 = vector.load %arg5[%c0_8, %c0_9, %c0_10] : memref<1x8x128xf32, #tpu.memory_space<vmem>>, vector<1x8x128xf32>
    %10 = vector.shape_cast %9 : vector<1x8x128xf32> to vector<8x128xf32>
    %11 = vector.shape_cast %8 : vector<8x128xf32> to vector<1x8x128xf32>
    tpu.vector_store %arg5[%c0_8, %c0_9, %c0_10], %11 {strides = array<i32>} : memref<1x8x128xf32, #tpu.memory_space<vmem>>, vector<1x8x128xf32>,
    return
  }
  func.func @transform_0(%arg0: i32, %arg1: i32) -> (i32, i32, i32) {
    %c0_i32 = arith.constant 0 : i32
    %c0_i32_0 = arith.constant 0 : i32
    return %arg0, %arg1, %c0_i32 : i32, i32, i32
  }
  func.func @transform_1(%arg0: i32, %arg1: i32) -> (i32, i32, i32) {
    %c0_i32 = arith.constant 0 : i32
    %c0_i32_0 = arith.constant 0 : i32
    %c0_i32_1 = arith.constant 0 : i32
    return %arg0, %c0_i32, %c0_i32_0 : i32, i32, i32
  }
  func.func @transform_2(%arg0: i32, %arg1: i32) -> (i32, i32, i32) {
    %c0_i32 = arith.constant 0 : i32
    %c0_i32_0 = arith.constant 0 : i32
    %c0_i32_1 = arith.constant 0 : i32
    return %arg0, %c0_i32, %c0_i32_0 : i32, i32, i32
  }
  func.func @transform_3(%arg0: i32, %arg1: i32) -> (i32, i32, i32) {
    %c0_i32 = arith.constant 0 : i32
    %c0_i32_0 = arith.constant 0 : i32
    return %arg0, %arg1, %c0_i32 : i32, i32, i32
  }
}

</mosaic_0001>

<bundles_post_ra>
// kernel: tpu_custom_call.1
= control target key start
LH: loop header
LB: loop body
LE: loop exit
PB: predicated region body
PF: predicated region fallthrough
CT: control target
= control target key end

     0   :  { %s937_s0 = inlined_call_operand.hbm [shape: f32[3,8,128], index: 0, kind: input, shape index: {}]   ;;  %s938_s1 = inlined_call_operand.hbm [shape: f32[3,128,128], index: 1, kind: input, shape index: {}]   ;;  %s939_s2 = inlined_call_operand.hbm [shape: f32[3,1,128], index: 2, kind: input, shape index: {}]   ;;  %s940_s3 = inlined_call_operand.hbm [shape: f32[3,8,128], index: 3, kind: output, shape index: {}]  }
   0x1   :  { %943 = sst [smem:[#allocation15_spill]] %s938_s1 }
   0x2   :  { %8 = vsyncpa [#allocation3], 0 }
   0x3   :  { %10 = vsyncpa [#allocation3 + $0x1], 0 }
   0x4   :  { %11 = vsyncpa [#allocation6], 0 }
   0x5   :  { %13 = vsyncpa [#allocation6 + $0x1], 0 }
   0x6   :  { %14 = vsyncpa [#allocation4], 0 }
   0x7   :  { %16 = vsyncpa [#allocation4 + $0x1], 0  ;;  %s750_s12 = smov 0   ;;  %s752_s13 = smov 0  }
   0x8   :  { %s754_s14 = smov 0   ;;  %s756_s15 = smov 0  }
   0x9   :  { %s758_s16 = smov 0   ;;  %s760_s17 = smov 0  }
   0xa LB: > { %944 = sst [smem:[#allocation12_spill]] %s714_s14  ;;  %s781_s18 = sadd.s32 4294967295, %s726_s17   ;;  %s726_s17 = sphi %s760_s17, %s22_s17   ;;  %s722_s16 = sphi %s758_s16, %s961_s16   ;;  %s718_s15 = sphi %s756_s15, %s960_s15   ;;  %s714_s14 = sphi %s754_s14, %s959_s14   ;;  %s710_s13 = sphi %s752_s13, %s958_s13   ;;  %s706_s12 = sphi %s750_s12, %s957_s12  }
   0xb   : > { %s458_s19 = sadd.s32 4294967294, %s726_s17   ;;  %s34_s20 = sadd.s32 1, %s722_s16 }
   0xc   : > { %s43_s21 = sadd.s32 1, %s714_s14  ;;  %p36_p0 = scmp.ge.s32.totalorder %s34_s20, 3 }
   0xd   : > { %p50_p1 = scmp.ne.s32.totalorder %s714_s14, %s710_s13  ;;  %p51_p2 = scmp.eq.s32.totalorder %s726_s17, 0 }
   0xe   : > { %p56_p3 = scmp.ne.s32.totalorder %s710_s13, %s706_s12  ;;  %s963_s20 = smov (%p36_p0, %s34_s20), 0 }
   0xf   : > { %945 = sst [smem:[#allocation13_spill]] %s963_s20  ;;  %p793_p4 = por %p51_p2, %p50_p1 }
  0x10   : > { %p57_p5 = scmp.eq.s32.totalorder %s781_s18, 0  ;;  %s38_s23 = ssub.s32 %s722_s16, %s963_s20 }
  0x11   : > { %p134_p6 = scmp.eq.s32.totalorder %s781_s18, 2  ;;  %p41_p7 = scmp.eq.s32.totalorder %s38_s23, 0 }
  0x12   : > { %p801_p8 = por %p57_p5, %p56_p3  ;;  %p140_p10 = scmp.eq.s32.totalorder %s458_s19, 2 }
  0x13   : > { %p805_p9 = por %p134_p6, %p50_p1  ;;  %p497_p12 = scmp.lt.s32.totalorder %s726_s17, 3 }
  0x14   : > { %s810_s26 = scalar_select %p41_p7, %s714_s14, %s43_s21  }
  0x15   : > { %p812_p11 = por %p140_p10, %p56_p3  ;;  %s818_s28 = sand.u32 1, %s714_s14  }
  0x16   : > { %949 = sst [smem:[#allocation14_spill]] %s810_s26  ;;  %s180_s29 = sand.u32 1, %s726_s17  }
  0x17   : > { %s463_s30 = sshll.u32 %s818_s28, 7  ;;  %p824_p13 = pnand %p497_p12, %p793_p4 }
  0x18   : > { %s474_s5 = sshll.u32 %s722_s16, 7  ;;  %s952_s1 = sld [smem:[#allocation15_spill]] }
  0x19   : > { %s184_s10 = scalar_lea.vmem [#allocation5], %s463_s30  ;;  %s181_s19 = scalar_lea.sflag [#allocation6], %s180_s29 }
  0x1a   : > { %s192_s11 = sshll.u32 %s184_s10, 4  ;;  %s728_s21 = smov 128   ;;  %s193_s11 = int_to_ptr.vmem [resolvable:$true] %s192_s11 }
  0x1b   : > { %s729_s22 = smov 8   ;;  %p466_p0 = scmp.ge.s32.totalorder %s726_s17, 1 }
  0x1c   : > { %p217_p1 = scmp.lt.s32.totalorder %s726_s17, 4  ;;  %s462_s30 = sshll.u32 %s722_s16, 3 }
  0x1d   : > { %s169_s29 = scalar_lea.hbm %s937_s0, %s462_s30  ;;  %s205_s26 = scalar_lea.vmem [#allocation7], %s818_s28 }
  0x1e   : > { %s189_s8 = scalar_lea.hbm %s952_s1, %s474_s5  ;;  %p836_p2 = pnand %p466_p0, %p217_p1 }
  0x1f   : > { %s190_s9 = sshll.u32 %s189_s8, 4  ;;  %s461_s5 = sshll.u32 %s818_s28, 3  ;;  %s191_s9 = int_to_ptr.hbm [resolvable:$true] %s190_s9 }
  0x20   : > { %489 = dma.hbm_to_vmem [thread:$0]  (!%p824_p13), %s191_s9, 2048, %s193_s11, %s181_s19, %s728_s21, %s728_s21, %s729_s22  }
  0x21   : > { %s171_s8 = sshll.u32 %s169_s29, 4  ;;  %s164_s10 = scalar_lea.vmem [#allocation2], %s461_s5  ;;  %s172_s8 = int_to_ptr.hbm [resolvable:$true] %s171_s8 }
  0x22   : > { %s173_s1 = sshll.u32 %s164_s10, 4  ;;  %s161_s9 = scalar_lea.sflag [#allocation3], %s818_s28  ;;  %s174_s1 = int_to_ptr.vmem [resolvable:$true] %s173_s1 }
  0x23   : > { %486 = dma.hbm_to_vmem [thread:$0]  (!%p824_p13), %s172_s8, 128, %s174_s1, %s161_s9  }
  0x24   : > { %s208_s22 = scalar_lea.hbm %s939_s2, %s722_s16  ;;  %s212_s14 = sshll.u32 %s205_s26, 4  ;;  %s213_s14 = int_to_ptr.vmem [resolvable:$true] %s212_s14 }
  0x25   : > { %s210_s20 = sshll.u32 %s208_s22, 4  ;;  %221 = sbr.rel (%p836_p2) target bundleno = 209 (0xd1), region = 32  ;;  %s211_s20 = int_to_ptr.hbm [resolvable:$true] %s210_s20 }
  0x26   : > { %492 = dma.hbm_to_vmem [thread:$0]  (!%p824_p13), %s211_s20, 16, %s213_s14, %s181_s19  }
  0x27   : > { %s858_s5 = sand.u32 (!%p836_p2), 1, %s710_s13  }
  0x28   : > { %s467_s1 = sshll.u32 (!%p836_p2), %s858_s5, 3  ;;  %s224_s30 = scalar_lea.sflag (!%p836_p2), [#allocation3], %s858_s5 }
  0x29   : > { %s864_s6 = scalar_lea.vmem (!%p836_p2), [#allocation2], %s467_s1 }
  0x2a   : > { %693 = dma.done.wait (%p801_p8), %s224_s30, 128  }
  0x2b   : > { %695 = vsyncadd (%p801_p8), %s224_s30, 4294967168  ;;  %s233_s14 = sand.u32 1, %s781_s18   ;;  %s468_s20 = sshll.u32 %s858_s5, 7 }
  0x2c   : > { %s234_s26 = scalar_lea.sflag [#allocation6], %s233_s14  ;;  %s872_s28 = scalar_lea.vmem [#allocation5], %s468_s20 }
  0x2d   : > { %697 = dma.done.wait (%p801_p8), %s234_s26, 2064  }
  0x2e   : > { %699 = vsyncadd (%p801_p8), %s234_s26, 4294965232  ;;  %v295_v0 = vld [vmem:[%s872_s28 + $0x78] sm:$0xff]  ;;  %v294_v1 = vld [vmem:[%s872_s28 + $0x70] sm:$0xff]  ;;  %s246_s18 = scalar_lea.vmem [#allocation7], %s858_s5  ;;  %s471_s24 = sshll.u32 %s718_s15, 3 }
  0x2f   : > { %300 = vmatpush.msra.mxu0 %v295_v0  ;;  %v293_v2 = vld [vmem:[%s872_s28 + $0x68] sm:$0xff]  ;;  %v292_v3 = vld [vmem:[%s872_s28 + $0x60] sm:$0xff]  ;;  %v291_v4 = vld [vmem:[%s872_s28 + $0x58] sm:$0xff]  ;;  %s333_s23 = scalar_lea.hbm %s940_s3, %s471_s24  ;;  %s278_s7 = scalar_lea.vmem [#allocation8], %s467_s1 }
  0x30   : > { %v290_v5 = vld [vmem:[%s872_s28 + $0x50] sm:$0xff]  ;;  %v289_v6 = vld [vmem:[%s872_s28 + $0x48] sm:$0xff]  ;;  %v288_v7 = vld [vmem:[%s872_s28 + $0x40] sm:$0xff]  ;;  %s335_s29 = sshll.u32 %s278_s7, 4  ;;  %s337_s8 = sshll.u32 %s333_s23, 4  ;;  %s336_s29 = int_to_ptr.vmem [resolvable:$true] %s335_s29  ;;  %s338_s8 = int_to_ptr.hbm [resolvable:$true] %s337_s8 }
  0x31   : > { %301 = vmatpush.msra.mxu0 %v294_v1  ;;  %v287_v8 = vld [vmem:[%s872_s28 + $0x38] sm:$0xff]  ;;  %v286_v9 = vld [vmem:[%s872_s28 + $0x30] sm:$0xff]  ;;  %v285_v10 = vld [vmem:[%s872_s28 + $0x28] sm:$0xff]  ;;  %s322_s10 = scalar_lea.sflag [#allocation4], %s858_s5  ;;  %s654_s9 = sshra.s32 %s338_s8, 4  ;;  %s655_s9 = int_to_ptr.hbm [resolvable:$true] %s654_s9 }
  0x32   : > { %v284_v11 = vld [vmem:[%s872_s28 + $0x20] sm:$0xff]  ;;  %v283_v12 = vld [vmem:[%s872_s28 + $0x18] sm:$0xff]  ;;  %v282_v13 = vld [vmem:[%s872_s28 + $0x10] sm:$0xff]  ;;  %s656_s15 = scalar_lea.hbm %s655_s9, 8  ;;  %s660_s22 = scalar_lea.hbm %s940_s3, 24 }
  0x33   : > { %302 = vmatpush.msra.mxu0 %v293_v2  ;;  %v281_v14 = vld [vmem:[%s872_s28 + $0x8] sm:$0xff]  ;;  %v280_v15 = vld [vmem:[%s872_s28] sm:$0xff]  ;;  %v279_v16 = vld [vmem:[%s864_s6] sm:$0xff]  ;;  %p657_p3 = scmp.ne.s32.totalorder %s655_s9, %s656_s15  ;;  %p661_p6 = scmp.lt.s32.totalorder %s655_s9, %s940_s3 }
  0x34   : > { %v549_v17 = vld [vmem:[%s246_s18] ss:$0 sm:$0xff]  ;;  %p662_p7 = scmp.lt.s32.totalorder %s660_s22, %s656_s15 }
  0x35   : > { %303 = vmatpush.msra.mxu0 %v292_v3  ;;  %p658_p4 = pnand %p657_p3, %p805_p9 }
  0x36   : > { %p663_p8 = por %p662_p7, %p661_p6 }
  0x37   : > { %304 = vmatpush.msra.mxu0 %v291_v4  ;;  %p659_p5 = pneg %p658_p4 }
  0x39   : > { %305 = vmatpush.msra.mxu0 %v290_v5  ;;  %p664_p10 = pnand %p663_p8, %p659_p5 }
  0x3b   : > { %306 = vmatpush.msra.mxu0 %v289_v6 }
  0x3d   : > { %307 = vmatpush.msra.mxu0 %v288_v7 }
  0x3f   : > { %308 = vmatpush.msra.mxu0 %v287_v8 }
  0x41   : > { %309 = vmatpush.msra.mxu0 %v286_v9 }
  0x43   : > { %310 = vmatpush.msra.mxu0 %v285_v10 }
  0x45   : > { %311 = vmatpush.msra.mxu0 %v284_v11 }
  0x47   : > { %312 = vmatpush.msra.mxu0 %v283_v12 }
  0x49   : > { %313 = vmatpush.msra.mxu0 %v282_v13 }
  0x4b   : > { %314 = vmatpush.msra.mxu0 %v281_v14 }
  0x4d   : > { %315 = vmatpush.msra.mxu0 %v280_v15 }
  0x4e   : > { %316 = vmatmul.f32.vlgmr.msra.gmra.mxu0 %v279_v16 }
  0xcb   : > { %v317_v18 = vpop.f32.mrf.mxu0 }
  0xcc   : > { %v318_v19 = vadd.f32 %v549_v17, %v317_v18 }
  0xce   : > { %320 = vst [vmem:[%s278_s7] sm:$0xff] %v318_v19 }
  0xcf   : > { %667 = shalt.err (!%p664_p10)
}
  0xd0   : > { %481 = dma.vmem_to_hbm [thread:$0]  (%p805_p9), %s336_s29, 128, %s338_s8, %s322_s10  }
  0xd1 PF: > { %p498_p12 = scmp.ge.s32.totalorder %s726_s17, 2  ;;  %s349_s5 = sand.u32 1, %s706_s12  }
  0xd2   : > { %s350_s6 = scalar_lea.sflag [#allocation4], %s349_s5 }
  0xd3   : > { %p494_p13 = pnand %p498_p12, %p812_p11 }
  0xd5   : > { %p495_p0 = pneg %p494_p13 }
  0xd7   : > { %701 = dma.done.wait (%p495_p0), %s350_s6, 128  }
  0xd8   : > { %703 = vsyncadd (%p495_p0), %s350_s6, 4294967168  ;;  %s22_s17 = sadd.s32 1, %s726_s17   ;;  %s954_s14 = sld [smem:[#allocation12_spill]] }
  0xd9   : > { %p19_p1 = scmp.ge.s32.totalorder %s22_s17, 5   ;;  %s955_s20 = sld [smem:[#allocation14_spill]] }
  0xda   : > { %s956_s25 = sld [smem:[#allocation13_spill]]  ;;  %s957_s12 = smov %s710_s13 }
  0xdb   : > { %s960_s15 = smov %s722_s16 }
  0xdc   :  { %21 = sbr.rel (!%p19_p1) target bundleno = 10 (0xa), region = 101 }
  0xde   : > { %s958_s13 = smov %s954_s14 }
  0xdf   : > { %s959_s14 = smov %s955_s20 }
  0xe0   : > { %s961_s16 = smov %s956_s25 }
  0xe1   :  { %356 = vsyncpa [#allocation3], 1 }
  0xe2   :  { %358 = vsyncpa [#allocation3 + $0x1], 1 }
  0xe3   :  { %359 = vsyncpa [#allocation6], 1 }
  0xe4   :  { %361 = vsyncpa [#allocation6 + $0x1], 1 }
  0xe5   :  { %362 = vsyncpa [#allocation4], 1 }
  0xe6   :  { %364 = vsyncpa [#allocation4 + $0x1], 1 }

</bundles_post_ra>
